<compile_context>
chip_gen: v7x
topology: tpu7x:2x2x1
jax: 0.10.0
libtpu: 0.0.40
codegen_flags: <defaults>
</compile_context>

<pallas_src>
import functools

import jax
import jax.numpy as jnp
from jax.experimental import pallas as pl
from jax.experimental.pallas import tpu as pltpu


def _round_up(a, m):
    return (a + m - 1) // m * m


def _block_kernel(x_ref, w_ref, m_ref, o_ref, acc_ref, *, ngroups, ws, nw,
                  ho, wo, negative_slope, eps):
    """One (image, Cout-tile) grid step.

    x_ref  : (C2, L)        bf16 phase-decomposed reflect-padded input,
                            x_ref[(p*s+q)*Cin + c, hs*Ws + w] = xpad[c, hs*s+p, w*s+q]
    w_ref  : (G*G, TC, C2)  bf16 conv taps grouped by (ki//s, kj//s)
    m_ref  : (1, NW)        f32 mask of valid output columns (flat = oh*Ws + ow)
    o_ref  : (TC, NW)       output tile (conv -> instance-norm -> leaky-relu)
    acc_ref: (TC, NW)       f32 VMEM scratch accumulator
    """
    G = ngroups
    # Grouped in-kernel im2col: one (TC, C2) @ (C2, NW) MXU matmul per tap
    # group -> G*G matmuls with contraction s*s*Cin (vs K*K matmuls with
    # contraction Cin).  f32 accumulation into VMEM scratch.
    for g in range(G * G):
        start = (g // G) * ws + (g % G)
        rhs = x_ref[:, start:start + nw]                       # (C2, NW) bf16
        part = jnp.dot(w_ref[g], rhs, preferred_element_type=jnp.float32)
        if g == 0:
            acc_ref[...] = part
        else:
            acc_ref[...] += part

    # InstanceNorm2d (affine=False, biased variance) over the valid columns
    # only, single-sweep statistics: mean and E[x^2] from one masked pass.
    # Conv bias is omitted: it cancels exactly under the mean subtraction.
    acc = acc_ref[...]
    mask = m_ref[...]
    inv_hw = 1.0 / float(ho * wo)
    am = acc * mask
    mean = jnp.sum(am, axis=-1, keepdims=True) * inv_hw
    ex2 = jnp.sum(am * acc, axis=-1, keepdims=True) * inv_hw
    var = ex2 - mean * mean
    inv_std = jax.lax.rsqrt(var + eps)

    y = (acc - mean) * inv_std
    # LeakyReLU(0.2).  Invalid columns hold junk but never enter the statistics
    # and are sliced off in the wrapper.
    o_ref[...] = jnp.maximum(y, negative_slope * y).astype(o_ref.dtype)


def block_forward(x, w, b, stride, *, negative_slope=0.2, eps=1e-5,
                  out_dtype=jnp.float32, cout_tile=256):
    """x: (N, Cin, H, W), w: (Cout, Cin, 4, 4), b: (Cout,) -> (N, Cout, Ho, Wo).

    `b` is accepted for API parity but unused: a per-channel constant bias is
    mathematically cancelled by InstanceNorm(affine=False).
    Use out_dtype=jnp.bfloat16 when the consumer is the next bf16 conv (halves
    HBM writeback).  On v5e prefer cout_tile=128 (128x128 MXU).
    """
    del b
    N, Cin, H, W = x.shape
    Cout, _, K, _ = w.shape
    s = int(stride)

    # ---- glue (plain XLA): reflect pad + phase decomposition, ~1x traffic ----
    xb = x.astype(jnp.bfloat16)                               # bf16 MXU operands
    xp = jnp.pad(xb, ((0, 0), (0, 0), (1, 1), (1, 1)), mode="reflect")
    Hp, Wp = H + 2, W + 2
    Ho = (Hp - K) // s + 1
    Wo = (Wp - K) // s + 1

    # zero-pad so the spatial dims divide the stride, then split into s*s phases
    Hp2, Wp2 = _round_up(Hp, s), _round_up(Wp, s)
    xp = jnp.pad(xp, ((0, 0), (0, 0), (0, Hp2 - Hp), (0, Wp2 - Wp)))
    Hs, Ws = Hp2 // s, Wp2 // s
    xph = xp.reshape(N, Cin, Hs, s, Ws, s)
    xph = xph.transpose(0, 3, 5, 1, 2, 4).reshape(N, s * s * Cin, Hs * Ws)

    # pad the flat spatial axis so every tap-group window stays in bounds and
    # the matmul N-dim (= output lane dim) is a multiple of 128 (lane-dense).
    G = -(-K // s)                        # ceil(K / s) tap groups per axis
    NW = _round_up(Ho * Ws, 128)
    L = max(Hs * Ws, (G - 1) * Ws + (G - 1) + NW)
    xph = jnp.pad(xph, ((0, 0), (0, 0), (0, L - Hs * Ws)))

    # ---- weights: group the s*s phase taps sharing (ki//s, kj//s) ----
    C2 = s * s * Cin
    wg = jnp.zeros((G * G, Cout, C2), jnp.float32)
    for gi in range(G):
        for gj in range(G):
            for p in range(min(s, K - gi * s)):
                for q in range(min(s, K - gj * s)):
                    ki, kj = gi * s + p, gj * s + q
                    col = (p * s + q) * Cin
                    wg = wg.at[gi * G + gj, :, col:col + Cin].set(w[:, :, ki, kj])

    # Cout tiling: one tile when small, else `cout_tile`-row parallel tiles.
    Cout8 = _round_up(Cout, 8)
    TC = Cout8 if Cout8 <= cout_tile else cout_tile
    Cout_p = _round_up(Cout8, TC)
    wg = jnp.pad(wg, ((0, 0), (0, Cout_p - Cout), (0, 0))).astype(jnp.bfloat16)

    # valid-column mask (flat col = oh*Ws + ow is valid iff oh < Ho and ow < Wo)
    cols = jnp.arange(NW, dtype=jnp.int32)
    mask = ((cols < Ho * Ws) & ((cols % Ws) < Wo)).astype(jnp.float32)
    mask = mask.reshape(1, NW)

    kernel = functools.partial(
        _block_kernel, ngroups=G, ws=Ws, nw=NW, ho=Ho, wo=Wo,
        negative_slope=negative_slope, eps=eps)

    out_itemsize = jnp.dtype(out_dtype).itemsize
    # per-grid-step VMEM footprint (double-buffered in/out + scratch) with slack;
    # floor at the v6e/v7x default (raises v5e's 16 MiB), cap at v7x physical.
    est = (2 * C2 * L * 2 + 2 * G * G * TC * C2 * 2 + 2 * NW * 4
           + 2 * TC * NW * out_itemsize + TC * NW * 4)
    vmem_limit = int(min(max(2 * est + (4 << 20), 32 << 20), 64 << 20))

    cost = pl.CostEstimate(
        flops=2 * N * Cout * Cin * K * K * Ho * Wo,
        transcendentals=N * Cout_p,
        bytes_accessed=(N * C2 * L * 2 + G * G * Cout_p * C2 * 2 + NW * 4
                        + N * Cout_p * NW * out_itemsize))

    out = pl.pallas_call(
        kernel,
        out_shape=jax.ShapeDtypeStruct((N, Cout_p, NW), out_dtype),
        grid_spec=pltpu.PrefetchScalarGridSpec(
            num_scalar_prefetch=0,
            grid=(N, Cout_p // TC),        # Cout tiles innermost: phase slab
            in_specs=[                     # stays VMEM-resident across them
                pl.BlockSpec((None, C2, L), lambda n, c: (n, 0, 0)),
                pl.BlockSpec((G * G, TC, C2), lambda n, c: (0, c, 0)),
                pl.BlockSpec((1, NW), lambda n, c: (0, 0)),
            ],
            out_specs=pl.BlockSpec((None, TC, NW), lambda n, c: (n, c, 0)),
            scratch_shapes=[pltpu.VMEM((TC, NW), jnp.float32)],
        ),
        compiler_params=pltpu.CompilerParams(
            dimension_semantics=("parallel", "parallel"),
            vmem_limit_bytes=vmem_limit),
        cost_estimate=cost,
    )(xph, wg, mask)

    # drop padded channels / wrap-around columns: -> (N, Cout, Ho, Wo)
    out = out[:, :Cout, :Ho * Ws].reshape(N, Cout, Ho, Ws)[:, :, :, :Wo]
    return out


def _ref_forward(x, w, b, stride, *, negative_slope=0.2, eps=1e-5):
    """Pure-JAX reference (keeps the conv bias; it must cancel in the norm)."""
    xp = jnp.pad(x, ((0, 0), (0, 0), (1, 1), (1, 1)), mode="reflect")
    conv = jax.lax.conv_general_dilated(
        xp, w, window_strides=(stride, stride), padding="VALID",
        dimension_numbers=("NCHW", "OIHW", "NCHW"),
        precision=jax.lax.Precision.HIGHEST)
    conv = conv + b[None, :, None, None]
    mean = conv.mean(axis=(2, 3), keepdims=True)
    var = conv.var(axis=(2, 3), keepdims=True)
    y = (conv - mean) / jnp.sqrt(var + eps)
    return jnp.where(y >= 0, y, negative_slope * y)


if __name__ == "__main__":
    def make_case(key, N, Cin, H, W, Cout, K):
        kx, kw, kb = jax.random.split(key, 3)
        x = jax.random.normal(kx, (N, Cin, H, W), dtype=jnp.float32)
        bound = 1.0 / ((Cin * K * K) ** 0.5)
        w = jax.random.uniform(kw, (Cout, Cin, K, K), jnp.float32, -bound, bound)
        b = jax.random.uniform(kb, (Cout,), jnp.float32, -bound, bound)
        return x, w, b

    # Block(in_channels=4, out_channels=8, stride=2) at 16x16 spatial.
    x, w, b = make_case(jax.random.PRNGKey(0), 2, 4, 16, 16, 8, 4)
    out = jax.block_until_ready(block_forward(x, w, b, 2))

    # Reference on bf16-rounded operands (the kernel feeds the MXU in bf16);
    # the reference keeps the conv bias, which must cancel under InstanceNorm.
    x_r = x.astype(jnp.bfloat16).astype(jnp.float32)
    w_r = w.astype(jnp.bfloat16).astype(jnp.float32)
    ref = jax.block_until_ready(_ref_forward(x_r, w_r, b, 2))
    assert out.shape == (2, 8, 8, 8), out.shape
    err = float(jnp.max(jnp.abs(out - ref)))
    assert jnp.allclose(out, ref, rtol=2e-3, atol=2e-3), err

    # stride=1 path (tap grouping degenerates to one matmul per tap).
    x1, w1, b1 = make_case(jax.random.PRNGKey(1), 1, 8, 12, 12, 16, 4)
    out1 = jax.block_until_ready(block_forward(x1, w1, b1, 1))
    ref1 = jax.block_until_ready(_ref_forward(
        x1.astype(jnp.bfloat16).astype(jnp.float32),
        w1.astype(jnp.bfloat16).astype(jnp.float32), b1, 1))
    assert out1.shape == (1, 16, 11, 11), out1.shape
    err1 = float(jnp.max(jnp.abs(out1 - ref1)))
    assert jnp.allclose(out1, ref1, rtol=2e-3, atol=2e-3), err1

    print("KERNEL_OK")
</pallas_src>

<mosaic_0001>
module attributes {stable_mosaic.version = 11 : i64} {
  func.func @_block_kernel(%arg0: i32, %arg1: i32, %arg2: memref<1x16x138xbf16, #tpu.memory_space<vmem>>, %arg3: memref<4x8x16xbf16, #tpu.memory_space<vmem>>, %arg4: memref<1x128xf32, #tpu.memory_space<vmem>>, %arg5: memref<1x8x128xf32, #tpu.memory_space<vmem>>, %arg6: memref<8x128xf32, #tpu.memory_space<vmem>>) attributes {dimension_semantics = [#tpu.dimension_semantics<parallel>, #tpu.dimension_semantics<parallel>], iteration_bounds = array<i64: 2, 1>, scalar_prefetch = 0 : i64, scratch_operands = 1 : i64, tpu.core_type = #tpu.core_type<tc>, window_params = [{transform_indices = @transform_0, window_bounds = array<i64: 1, 16, 138>}, {transform_indices = @transform_1, window_bounds = array<i64: 4, 8, 16>}, {pipeline_mode = #tpu.pipeline_mode<synchronous>, transform_indices = @transform_2, window_bounds = array<i64: 1, 128>}, {transform_indices = @transform_3, window_bounds = array<i64: 1, 8, 128>}]} {
    %c0 = arith.constant 0 : index
    %c0_0 = arith.constant 0 : index
    %c0_1 = arith.constant 0 : index
    %0 = vector.load %arg2[%c0, %c0_0, %c0_1] : memref<1x16x138xbf16, #tpu.memory_space<vmem>>, vector<1x16x128xbf16>
    %1 = vector.shape_cast %0 : vector<1x16x128xbf16> to vector<16x128xbf16>
    %c0_2 = arith.constant 0 : index
    %c0_3 = arith.constant 0 : index
    %c0_4 = arith.constant 0 : index
    %2 = vector.load %arg3[%c0_2, %c0_3, %c0_4] : memref<4x8x16xbf16, #tpu.memory_space<vmem>>, vector<1x8x16xbf16>
    %3 = vector.shape_cast %2 : vector<1x8x16xbf16> to vector<8x16xbf16>
    %cst = arith.constant dense<0.000000e+00> : vector<8x128xf32>
    %4 = tpu.matmul %3, %1, %cst {dimension_numbers = #tpu.dot_dimension_numbers<[1], [0], [0], [1], [0, 0, 1, 1], [], []>} : vector<8x16xbf16>, vector<16x128xbf16>, vector<8x128xf32> -> vector<8x128xf32>
    %c0_5 = arith.constant 0 : index
    %c0_6 = arith.constant 0 : index
    %5 = vector.load %arg6[%c0_5, %c0_6] : memref<8x128xf32, #tpu.memory_space<vmem>>, vector<8x128xf32>
    tpu.vector_store %arg6[%c0_5, %c0_6], %4 {strides = array<i32>} : memref<8x128xf32, #tpu.memory_space<vmem>>, vector<8x128xf32>,
    %c0_7 = arith.constant 0 : index
    %c0_8 = arith.constant 0 : index
    %c1 = arith.constant 1 : index
    %6 = vector.load %arg2[%c0_7, %c0_8, %c1] : memref<1x16x138xbf16, #tpu.memory_space<vmem>>, vector<1x16x128xbf16>
    %7 = vector.shape_cast %6 : vector<1x16x128xbf16> to vector<16x128xbf16>
    %c1_9 = arith.constant 1 : index
    %c0_10 = arith.constant 0 : index
    %c0_11 = arith.constant 0 : index
    %8 = vector.load %arg3[%c1_9, %c0_10, %c0_11] : memref<4x8x16xbf16, #tpu.memory_space<vmem>>, vector<1x8x16xbf16>
    %9 = vector.shape_cast %8 : vector<1x8x16xbf16> to vector<8x16xbf16>
    %cst_12 = arith.constant dense<0.000000e+00> : vector<8x128xf32>
    %10 = tpu.matmul %9, %7, %cst_12 {dimension_numbers = #tpu.dot_dimension_numbers<[1], [0], [0], [1], [0, 0, 1, 1], [], []>} : vector<8x16xbf16>, vector<16x128xbf16>, vector<8x128xf32> -> vector<8x128xf32>
    %c0_13 = arith.constant 0 : index
    %c0_14 = arith.constant 0 : index
    %11 = vector.load %arg6[%c0_13, %c0_14] : memref<8x128xf32, #tpu.memory_space<vmem>>, vector<8x128xf32>
    %12 = arith.addf %11, %10 : vector<8x128xf32>
    %c0_15 = arith.constant 0 : index
    %c0_16 = arith.constant 0 : index
    %13 = vector.load %arg6[%c0_15, %c0_16] : memref<8x128xf32, #tpu.memory_space<vmem>>, vector<8x128xf32>
    tpu.vector_store %arg6[%c0_15, %c0_16], %12 {strides = array<i32>} : memref<8x128xf32, #tpu.memory_space<vmem>>, vector<8x128xf32>,
    %c0_17 = arith.constant 0 : index
    %c0_18 = arith.constant 0 : index
    %c9 = arith.constant 9 : index
    %14 = vector.load %arg2[%c0_17, %c0_18, %c9] : memref<1x16x138xbf16, #tpu.memory_space<vmem>>, vector<1x16x128xbf16>
    %15 = vector.shape_cast %14 : vector<1x16x128xbf16> to vector<16x128xbf16>
    %c2 = arith.constant 2 : index
    %c0_19 = arith.constant 0 : index
    %c0_20 = arith.constant 0 : index
    %16 = vector.load %arg3[%c2, %c0_19, %c0_20] : memref<4x8x16xbf16, #tpu.memory_space<vmem>>, vector<1x8x16xbf16>
    %17 = vector.shape_cast %16 : vector<1x8x16xbf16> to vector<8x16xbf16>
    %cst_21 = arith.constant dense<0.000000e+00> : vector<8x128xf32>
    %18 = tpu.matmul %17, %15, %cst_21 {dimension_numbers = #tpu.dot_dimension_numbers<[1], [0], [0], [1], [0, 0, 1, 1], [], []>} : vector<8x16xbf16>, vector<16x128xbf16>, vector<8x128xf32> -> vector<8x128xf32>
    %c0_22 = arith.constant 0 : index
    %c0_23 = arith.constant 0 : index
    %19 = vector.load %arg6[%c0_22, %c0_23] : memref<8x128xf32, #tpu.memory_space<vmem>>, vector<8x128xf32>
    %20 = arith.addf %19, %18 : vector<8x128xf32>
    %c0_24 = arith.constant 0 : index
    %c0_25 = arith.constant 0 : index
    %21 = vector.load %arg6[%c0_24, %c0_25] : memref<8x128xf32, #tpu.memory_space<vmem>>, vector<8x128xf32>
    tpu.vector_store %arg6[%c0_24, %c0_25], %20 {strides = array<i32>} : memref<8x128xf32, #tpu.memory_space<vmem>>, vector<8x128xf32>,
    %c0_26 = arith.constant 0 : index
    %c0_27 = arith.constant 0 : index
    %c10 = arith.constant 10 : index
    %22 = vector.load %arg2[%c0_26, %c0_27, %c10] : memref<1x16x138xbf16, #tpu.memory_space<vmem>>, vector<1x16x128xbf16>
    %23 = vector.shape_cast %22 : vector<1x16x128xbf16> to vector<16x128xbf16>
    %c3 = arith.constant 3 : index
    %c0_28 = arith.constant 0 : index
    %c0_29 = arith.constant 0 : index
    %24 = vector.load %arg3[%c3, %c0_28, %c0_29] : memref<4x8x16xbf16, #tpu.memory_space<vmem>>, vector<1x8x16xbf16>
    %25 = vector.shape_cast %24 : vector<1x8x16xbf16> to vector<8x16xbf16>
    %cst_30 = arith.constant dense<0.000000e+00> : vector<8x128xf32>
    %26 = tpu.matmul %25, %23, %cst_30 {dimension_numbers = #tpu.dot_dimension_numbers<[1], [0], [0], [1], [0, 0, 1, 1], [], []>} : vector<8x16xbf16>, vector<16x128xbf16>, vector<8x128xf32> -> vector<8x128xf32>
    %c0_31 = arith.constant 0 : index
    %c0_32 = arith.constant 0 : index
    %27 = vector.load %arg6[%c0_31, %c0_32] : memref<8x128xf32, #tpu.memory_space<vmem>>, vector<8x128xf32>
    %28 = arith.addf %27, %26 : vector<8x128xf32>
    %c0_33 = arith.constant 0 : index
    %c0_34 = arith.constant 0 : index
    %29 = vector.load %arg6[%c0_33, %c0_34] : memref<8x128xf32, #tpu.memory_space<vmem>>, vector<8x128xf32>
    tpu.vector_store %arg6[%c0_33, %c0_34], %28 {strides = array<i32>} : memref<8x128xf32, #tpu.memory_space<vmem>>, vector<8x128xf32>,
    %c0_35 = arith.constant 0 : index
    %c0_36 = arith.constant 0 : index
    %30 = vector.load %arg6[%c0_35, %c0_36] : memref<8x128xf32, #tpu.memory_space<vmem>>, vector<8x128xf32>
    %c0_37 = arith.constant 0 : index
    %c0_38 = arith.constant 0 : index
    %31 = vector.load %arg4[%c0_37, %c0_38] : memref<1x128xf32, #tpu.memory_space<vmem>>, vector<1x128xf32>
    %32 = vector.broadcast %31 : vector<1x128xf32> to vector<8x128xf32>
    %33 = arith.mulf %30, %32 : vector<8x128xf32>
    %cst_39 = arith.constant dense<0.000000e+00> : vector<8xf32>
    %34 = vector.multi_reduction <add>, %33, %cst_39 [1] : vector<8x128xf32> to vector<8xf32>
    %35 = vector.shape_cast %34 : vector<8xf32> to vector<8x1xf32>
    %cst_40 = arith.constant 1.562500e-02 : f32
    %36 = vector.broadcast %cst_40 : f32 to vector<8x1xf32>
    %37 = arith.mulf %35, %36 : vector<8x1xf32>
    %38 = arith.mulf %33, %30 : vector<8x128xf32>
    %cst_41 = arith.constant dense<0.000000e+00> : vector<8xf32>
    %39 = vector.multi_reduction <add>, %38, %cst_41 [1] : vector<8x128xf32> to vector<8xf32>
    %40 = vector.shape_cast %39 : vector<8xf32> to vector<8x1xf32>
    %cst_42 = arith.constant 1.562500e-02 : f32
    %41 = vector.broadcast %cst_42 : f32 to vector<8x1xf32>
    %42 = arith.mulf %40, %41 : vector<8x1xf32>
    %43 = arith.mulf %37, %37 : vector<8x1xf32>
    %44 = arith.subf %42, %43 : vector<8x1xf32>
    %cst_43 = arith.constant 9.99999974E-6 : f32
    %45 = vector.broadcast %cst_43 : f32 to vector<8x1xf32>
    %46 = arith.addf %44, %45 : vector<8x1xf32>
    %47 = math.rsqrt %46 : vector<8x1xf32>
    %48 = vector.broadcast %37 : vector<8x1xf32> to vector<8x128xf32>
    %49 = arith.subf %30, %48 : vector<8x128xf32>
    %50 = vector.broadcast %47 : vector<8x1xf32> to vector<8x128xf32>
    %51 = arith.mulf %49, %50 : vector<8x128xf32>
    %cst_44 = arith.constant 2.000000e-01 : f32
    %52 = vector.broadcast %cst_44 : f32 to vector<8x128xf32>
    %53 = arith.mulf %52, %51 : vector<8x128xf32>
    %54 = arith.maximumf %51, %53 : vector<8x128xf32>
    %c0_45 = arith.constant 0 : index
    %c0_46 = arith.constant 0 : index
    %c0_47 = arith.constant 0 : index
    %55 = vector.load %arg5[%c0_45, %c0_46, %c0_47] : memref<1x8x128xf32, #tpu.memory_space<vmem>>, vector<1x8x128xf32>
    %56 = vector.shape_cast %55 : vector<1x8x128xf32> to vector<8x128xf32>
    %57 = vector.shape_cast %54 : vector<8x128xf32> to vector<1x8x128xf32>
    tpu.vector_store %arg5[%c0_45, %c0_46, %c0_47], %57 {strides = array<i32>} : memref<1x8x128xf32, #tpu.memory_space<vmem>>, vector<1x8x128xf32>,
    return
  }
  func.func @transform_0(%arg0: i32, %arg1: i32) -> (i32, i32, i32) {
    %c0_i32 = arith.constant 0 : i32
    %c0_i32_0 = arith.constant 0 : i32
    %c0_i32_1 = arith.constant 0 : i32
    return %arg0, %c0_i32, %c0_i32_0 : i32, i32, i32
  }
  func.func @transform_1(%arg0: i32, %arg1: i32) -> (i32, i32, i32) {
    %c0_i32 = arith.constant 0 : i32
    %c0_i32_0 = arith.constant 0 : i32
    %c0_i32_1 = arith.constant 0 : i32
    return %c0_i32, %arg1, %c0_i32_0 : i32, i32, i32
  }
  func.func @transform_2(%arg0: i32, %arg1: i32) -> (i32, i32) {
    %c0_i32 = arith.constant 0 : i32
    %c0_i32_0 = arith.constant 0 : i32
    %c0_i32_1 = arith.constant 0 : i32
    return %c0_i32, %c0_i32_0 : i32, i32
  }
  func.func @transform_3(%arg0: i32, %arg1: i32) -> (i32, i32, i32) {
    %c0_i32 = arith.constant 0 : i32
    %c0_i32_0 = arith.constant 0 : i32
    return %arg0, %arg1, %c0_i32 : i32, i32, i32
  }
}

</mosaic_0001>

<bundles_post_ra>
// kernel: tpu_custom_call.1
= control target key start
LH: loop header
LB: loop body
LE: loop exit
PB: predicated region body
PF: predicated region fallthrough
CT: control target
= control target key end

     0   :  { %8 = vsyncpa [#allocation4], 0  ;;  %s1171_s0 = inlined_call_operand.hbm [shape: bf16[2,16,138], index: 0, kind: input, shape index: {}]   ;;  %s1172_s1 = inlined_call_operand.hbm [shape: bf16[4,8,16], index: 1, kind: input, shape index: {}]   ;;  %s1173_s2 = inlined_call_operand.vmem [shape: f32[1,128], index: 2, kind: input, shape index: {}]   ;;  %s1174_s3 = inlined_call_operand.hbm [shape: f32[2,8,128], index: 3, kind: output, shape index: {}]  }
   0x1   :  { %10 = vsyncpa [#allocation4 + $0x1], 0 }
   0x2   :  { %11 = vsyncpa [#allocation7], 0 }
   0x3   :  { %12 = vsyncpa [#allocation5], 0 }
   0x4   :  { %14 = vsyncpa [#allocation5 + $0x1], 0  ;;  %s942_s12 = smov 0   ;;  %s944_s13 = smov 0  }
   0x5   :  { %s946_s14 = smov 0   ;;  %s948_s15 = smov 0  }
   0x6   :  { %s950_s16 = smov 0   ;;  %s952_s17 = smov 0  }
   0x7 LB: > { %s606_s18 = sadd.s32 4294967295, %s908_s17   ;;  %s607_s19 = sadd.s32 4294967294, %s908_s17   ;;  %s908_s17 = sphi %s952_s17, %s20_s17   ;;  %s904_s16 = sphi %s950_s16, %s1198_s16   ;;  %s900_s15 = sphi %s948_s15, %s1197_s15   ;;  %s896_s14 = sphi %s946_s14, %s1196_s14   ;;  %s892_s13 = sphi %s944_s13, %s1195_s13   ;;  %s888_s12 = sphi %s942_s12, %s1194_s12  }
   0x8   : > { %p52_p0 = scmp.ne.s32.totalorder %s892_s13, %s888_s12  ;;  %p976_p1 = scmp.eq.s32.totalorder %s606_s18, 0 }
   0x9   : > { %p980_p2 = scmp.eq.s32.totalorder %s606_s18, 1  ;;  %p131_p3 = scmp.eq.s32.totalorder %s607_s19, 1 }
   0xa   : > { %s1179_s20 = scalar_select %p976_p1, 1, 0 }
   0xb   : > { %s1180_s21 = scalar_select %p980_p2, 1, 0 }
   0xc   : > { %p986_p4 = por %p976_p1, %p52_p0  ;;  %p608_p5 = scmp.ge.s32.totalorder %s908_s17, 1 }
   0xd   : > { %p991_p6 = por %p131_p3, %p52_p0  ;;  %p138_p7 = scmp.lt.s32.totalorder %s908_s17, 3 }
   0xe   : > { %s1181_s22 = scalar_select %p986_p4, 1, 0 }
   0xf   : > { %s1182_s23 = scalar_select %p991_p6, 1, 0 }
  0x10   : > { %p996_p8 = pnand %p608_p5, %p138_p7  ;;  %s910_s25 = smov [#allocation6]  }
  0x11   : > { %s152_s26 = sshll.u32 %s910_s25, 4  ;;  %s32_s28 = sadd.s32 1, %s904_s16  ;;  %s153_s26 = int_to_ptr.vmem [resolvable:$true] %s152_s26 }
  0x12   : > { %s1183_s24 = scalar_select %p996_p8, 1, 0 }
  0x13   : > { %p684_p9 = pneg %p996_p8  ;;  %s764_s4 = scalar_lea.hbm %s1172_s1, 256 }
  0x14   : > { %p765_p12 = scmp.ne.s32.totalorder %s1172_s1, %s764_s4  ;;  %p771_p5 = scmp.lt.u32.totalorder %s764_s4, %s1172_s1 }
  0x15   : > { %p1005_p11 = pnand %p684_p9, %p976_p1 }
  0x17   : > { %p766_p13 = pneg %p1005_p11 }
  0x19   : > { %p767_p0 = pnand %p766_p13, %p765_p12 }
  0x1b   : > { %p768_p3 = pneg %p767_p0 }
  0x1d   : > { %p773_p7 = pnand %p771_p5, %p768_p3 }
  0x1f   : > { %776 = shalt.err (!%p773_p7)
}
  0x20   : > { %s777_s9 = scalar_lea.vmem %s153_s26, 256  ;;  %p785_p1 = scmp.lt.s32.totalorder %s153_s26, %s153_s26 }
  0x21   : > { %p778_p9 = scmp.ne.s32.totalorder %s153_s26, %s777_s9  ;;  %p786_p4 = scmp.lt.s32.totalorder %s777_s9, %s777_s9 }
  0x23   : > { %p780_p10 = pnand %p778_p9, %p766_p13  ;;  %p787_p8 = por %p786_p4, %p785_p1 }
  0x25   : > { %p781_p6 = pneg %p780_p10 }
  0x27   : > { %p788_p2 = pnand %p787_p8, %p781_p6 }
  0x29   : > { %791 = shalt.err (!%p788_p2)
}
  0x2a   : > { %s911_s10 = smov 64   ;;  %s912_s11 = smov 4  }
  0x2b   : > { %687 = dma.hbm_to_vmem [thread:$0]  (!%p1005_p11), %s1172_s1, 256, %s153_s26, [#allocation7], %s911_s10, %s911_s10, %s912_s11  }
  0x2c   : > { %p34_p1 = scmp.ge.s32.totalorder %s32_s28, 2  ;;  %s39_s25 = sadd.s32 1, %s896_s14 }
  0x2d   : > { %p46_p2 = scmp.ne.s32.totalorder %s896_s14, %s892_s13  ;;  %p47_p4 = scmp.eq.s32.totalorder %s908_s17, 0 }
  0x2e   : > { %s1200_s28 = smov (%p34_p1, %s32_s28), 0  ;;  %p1186_p8 = scmp.ne.s32.totalorder %s1180_s21, 0 }
  0x2f   : > { %p1032_p6 = por %p47_p4, %p46_p2  ;;  %s36_s27 = ssub.s32 %s904_s16, %s1200_s28 }
  0x30   : > { %p1038_p10 = por %p1186_p8, %p46_p2  ;;  %p697_p12 = scmp.lt.s32.totalorder %s908_s17, 2 }
  0x31   : > { %p37_p11 = scmp.eq.s32.totalorder %s36_s27, 0  ;;  %s169_s26 = sand.u32 1, %s896_s14  }
  0x32   : > { %s611_s4 = sshll.u32 %s169_s26, 4  ;;  %s634_s6 = sshll.u32 %s904_s16, 8 }
  0x33   : > { %s1047_s5 = scalar_select %p37_p11, %s896_s14, %s39_s25  }
  0x34   : > { %s1053_s9 = scalar_lea.hbm %s1171_s0, %s634_s6  ;;  %s173_s21 = scalar_lea.vmem [#allocation3], %s611_s4 }
  0x35   : > { %s180_s10 = sshll.u32 %s173_s21, 4  ;;  %p1059_p13 = pnand %p697_p12, %p1032_p6  ;;  %s1055_s10 = int_to_ptr.vmem [resolvable:$true] %s180_s10 }
  0x36   : > { %s1063_s18 = scalar_lea.sflag [#allocation4], %s169_s26  ;;  %s792_s19 = scalar_lea.hbm %s1053_s9, 256 }
  0x37   : > { %p793_p0 = scmp.ne.s32.totalorder %s1053_s9, %s792_s19  ;;  %p794_p3 = pneg %p1059_p13 }
  0x38   : > { %s797_s29 = scalar_lea.hbm %s1171_s0, 512  ;;  %p798_p9 = scmp.lt.u32.totalorder %s1053_s9, %s1171_s0 }
  0x39   : > { %p795_p5 = pnand %p794_p3, %p793_p0  ;;  %p799_p1 = scmp.lt.u32.totalorder %s797_s29, %s792_s19 }
  0x3a   : > { %p801_p4 = scmp.lt.u32.totalorder %s792_s19, %s1053_s9 }
  0x3b   : > { %p796_p7 = pneg %p795_p5  ;;  %p800_p2 = por %p799_p1, %p798_p9 }
  0x3d   : > { %p802_p6 = por %p801_p4, %p800_p2 }
  0x3f   : > { %p803_p8 = pnand %p802_p6, %p796_p7 }
  0x41   : > { %806 = shalt.err (!%p803_p8)
}
  0x42   : > { %s807_s26 = scalar_lea.vmem %s1055_s10, 256  ;;  %s913_s7 = smov [#allocation3]  }
  0x43   : > { %p808_p12 = scmp.ne.s32.totalorder %s1055_s10, %s807_s26  ;;  %s812_s8 = sshll.u32 %s913_s7, 4  ;;  %s813_s8 = int_to_ptr.vmem [resolvable:$false] %s812_s8 }
  0x44   : > { %s814_s21 = scalar_lea.vmem %s813_s8, 512  ;;  %p815_p5 = scmp.lt.s32.totalorder %s1055_s10, %s813_s8 }
  0x45   : > { %p810_p11 = pnand %p808_p12, %p794_p3  ;;  %p816_p9 = scmp.lt.s32.totalorder %s814_s21, %s807_s26 }
  0x47   : > { %p811_p0 = pneg %p810_p11  ;;  %p817_p1 = por %p816_p9, %p815_p5 }
  0x49   : > { %p818_p2 = pnand %p817_p1, %p811_p0 }
  0x4b   : > { %821 = shalt.err (!%p818_p2)
}
  0x4c   : > { %s914_s19 = smov 128   ;;  %s915_s25 = smov 8  }
  0x4d   : > { %691 = dma.hbm_to_vmem [thread:$0]  (!%p1059_p13), %s1053_s9, 256, %s1055_s10, %s1063_s18, %s914_s19, %s914_s19, %s915_s25  }
  0x4e   : > { %p1189_p3 = scmp.ne.s32.totalorder %s1183_s24, 0 }
  0x4f   : > { %s1094_s27 = sand.u32 (!%p1189_p3), 1, %s892_s13   ;;  %p1190_p7 = scmp.ne.s32.totalorder (!%p1189_p3), %s1181_s22, 0 }
  0x50   : > { %192 = sbr.rel (%p1189_p3) target bundleno = 626 (0x272), region = 32  ;;  %s615_s29 = sshll.u32 (!%p1189_p3), %s1094_s27, 4 }
  0x51   : > { %s195_s4 = scalar_lea.sflag (!%p1189_p3), [#allocation4], %s1094_s27  ;;  %s198_s6 = scalar_lea.vmem (!%p1189_p3), [#allocation3], %s615_s29 }
  0x57   : > { %875 = dma.done.wait (%p1190_p7), %s195_s4, 256  }
  0x58   : > { %877 = vsyncadd (%p1190_p7), %s195_s4, 4294967040  ;;  %p1191_p4 = scmp.ne.s32.totalorder %s1179_s20, 0 }
  0x5a   : > { %879 = dma.done.wait (%p1191_p4), [#allocation7], 256  }
  0x5b   : > { %881 = vsyncadd (%p1191_p4), [#allocation7], 4294967040  ;;  %v916_v0 = vmov 0.0   ;;  %vm917_vm0 = vmmov 0   ;;  %v758_v1 = vld [vmem:[%s198_s6] ss:$8 sps:$4 sm:$0xff]  }
  0x5c   : > { %643 = vmatprep.subr.bf16.mxu1 %v916_v0  ;;  %645 = vmatprep.mubr.msk.bf16.mxu1 %vm917_vm0, %v916_v0  ;;  %v760_v2 = vld [vmem:[%s198_s6 + $0x4] ss:$8 sps:$4 sm:$0xff]   ;;  %s918_s24 = smov 119   ;;  %s919_s22 = smov 127   ;;  %v761_v3 = vld [vmem:[%s198_s6] ss:$8 sps:$4 sm:$0xff]  }
  0x5d   : > { %655 = vmatprep.subr.bf16.mxu0 %v916_v0  ;;  %657 = vmatprep.mubr.msk.bf16.mxu0 %vm917_vm0, %v916_v0  ;;  %v228_v4 = vld [vmem:[#allocation6] sm:$0xf]  ;;  %vm235_vm1 = vcmask 130048   ;;  %s920_s20 = smov 118   ;;  %vm296_vm2 = vcmask 1039360   ;;  %vm361_vm3 = vcmask 973824  }
  0x5e   : > { %357 = vrot.lane.b32.xlu0 %v758_v1, %s918_s24  ;;  %292 = vrot.lane.b32.xlu1 %v758_v1, %s919_s22  ;;  %vm426_vm4 = vcmask 965632   ;;  %v283_v11 = vld [vmem:[#allocation6 + $0x4] sm:$0xf]  ;;  %v348_v12 = vld [vmem:[#allocation6 + $0x8] sm:$0xf]  ;;  %s617_s11 = sshll.u32 %s1094_s27, 3 }
  0x5f   : > { %644 = vmatpush3.bf16.msra.mxu1 %v761_v3  ;;  %v413_v16 = vld [vmem:[#allocation6 + $0xc] sm:$0xf]  ;;  %v629_v22 = vld [vmem:[%s1173_s2] ss:$0 sm:$0xff]  ;;  %s631_s18 = sshll.u32 %s900_s15, 7  ;;  %s224_s26 = scalar_lea.vmem [#allocation8], %s617_s11 }
  0x60   : > { %649 = vmatprep.subr.bf16.mxu1 %v916_v0  ;;  %s515_s7 = sshll.u32 %s224_s26, 4  ;;  %s1122_s19 = scalar_lea.hbm %s1174_s3, %s631_s18  ;;  %s1124_s7 = int_to_ptr.vmem [resolvable:$true] %s515_s7 }
  0x61   : > { %s501_s25 = scalar_lea.sflag [#allocation5], %s1094_s27  ;;  %s822_s29 = scalar_lea.vmem %s1124_s7, 128 }
  0x62   : > { %359 = vrot.lane.b32.xlu0 %v760_v2, %s918_s24  ;;  %294 = vrot.lane.b32.xlu1 %v760_v2, %s919_s22  ;;  %p823_p13 = scmp.ne.s32.totalorder %s1124_s7, %s822_s29  ;;  %s921_s15 = smov [#allocation8]  }
  0x63   : > { %646 = vmatmul.mubr.msk.bf16.vlgmr.msra.gmra.mrb[0].mxu1 %vm235_vm1, %v228_v4  ;;  %s826_s4 = sshll.u32 %s921_s15, 4  ;;  %s827_s4 = int_to_ptr.vmem [resolvable:$false] %s826_s4 }
  0x64   : > { %651 = vmatprep.mubr.msk.bf16.mxu1 %vm917_vm0, %v916_v0  ;;  %p824_p6 = pnand %p823_p13, %p1038_p10  ;;  %s828_s6 = scalar_lea.vmem %s827_s4, 256 }
  0x65   : > { %p829_p12 = scmp.lt.s32.totalorder %s1124_s7, %s827_s4  ;;  %p830_p11 = scmp.lt.s32.totalorder %s828_s6, %s822_s29 }
  0x66   : > { %422 = vrot.lane.b32.xlu0 %v758_v1, %s920_s20  ;;  %424 = vrot.lane.b32.xlu1 %v760_v2, %s920_s20  ;;  %p825_p8 = pneg %p824_p6 }
  0x67   : > { %p831_p0 = por %p830_p11, %p829_p12 }
  0x69   : > { %p832_p5 = pnand %p831_p0, %p825_p8 }
  0xd0   : > { %v358_v5 = vpop.permute.xlu0 %357  ;;  %v293_v6 = vpop.permute.xlu1 %292 }
  0xd4   : > { %v360_v7 = vpop.permute.xlu0 %359  ;;  %v295_v8 = vpop.permute.xlu1 %294 }
  0xd5   : > { %v297_v9 = vsel %vm296_vm2, %v293_v6, %v295_v8  ;;  %v362_v10 = vsel %vm361_vm3, %v358_v5, %v360_v7 }
  0xd6   : > { %650 = vmatpush3.bf16.msra.mxu1 %v297_v9  ;;  %656 = vmatpush3.bf16.msra.mxu0 %v362_v10 }
  0xd7   : > { %661 = vmatprep.subr.bf16.mxu0 %v916_v0 }
  0xd8   : > { %v423_v13 = vpop.permute.xlu0 %422  ;;  %v425_v14 = vpop.permute.xlu1 %424 }
  0xd9   : > { %v427_v15 = vsel %vm426_vm4, %v423_v13, %v425_v14  ;;  %652 = vmatmul.mubr.msk.bf16.vlgmr.msra.gmra.mrb[0].mxu1 %vm235_vm1, %v283_v11  ;;  %658 = vmatmul.mubr.msk.bf16.vlgmr.msra.gmra.mrb[0].mxu0 %vm235_vm1, %v348_v12 }
  0xda   : > { %662 = vmatpush3.bf16.msra.mxu0 %v427_v15  ;;  %663 = vmatprep.mubr.msk.bf16.mxu0 %vm917_vm0, %v916_v0 }
  0xe5   : > { %664 = vmatmul.mubr.msk.bf16.vlgmr.msra.gmra.mrb[0].mxu0 %vm235_vm1, %v413_v16 }
 0x1ac   : > { %v336_v17 = vpop.f32.mrb[0].mxu1 }
 0x1ad   : > { %v653_v18 = vpop.f32.mrb[1].mxu1 }
 0x1ae   : > { %v339_v19 = vpop.f32.mrb[2].mxu1 }
 0x1af   : > { %v654_v20 = vpop.f32.mrb[3].mxu1 }
 0x1b8   : > { %v466_v21 = vpop.f32.mrb[0].mxu0 }
 0x1b9   : > { %v667_v23 = vadd.f32 %v466_v21, %v336_v17  ;;  %v665_v24 = vpop.f32.mrb[1].mxu0 }
 0x1ba   : > { %v469_v25 = vpop.f32.mrb[2].mxu0 }
 0x1bb   : > { %v666_v26 = vpop.f32.mrb[3].mxu0  ;;  %v483_v27 = vmul.f32 %v667_v23, %v629_v22 }
 0x1bd   : > { %484 = vadd.xlane.f32.xlu0 %v483_v27  ;;  %v487_v28 = vmul.f32 %v667_v23, %v483_v27 }
 0x1bf   : > { %488 = vadd.xlane.f32.xlu1 %v487_v28 }
 0x24a   : > { %v485_v29 = vpop.xlane.xlu0 %484 }
 0x24b   : > { %v486_v30 = vmul.f32 0.015625, %v485_v29 }
 0x24c   : > { %v489_v31 = vpop.xlane.xlu1 %488 }
 0x24d   : > { %v491_v32 = vmul.f32 %v486_v30, %v486_v30  ;;  %v490_v33 = vmul.f32 0.015625, %v489_v31  ;;  %v495_v36 = vsub.f32 %v667_v23, %v486_v30 }
 0x24f   : > { %v492_v34 = vsub.f32 %v490_v33, %v491_v32 }
 0x251   : > { %v493_v35 = vadd.f32 1e-05, %v492_v34 }
 0x253   : > { %762 = vrsqrt.f32 %v493_v35 }
 0x25d   : > { %v763_v37 = vpop.eup %762 }
 0x25e   : > { %v496_v38 = vmul.f32 %v763_v37, %v495_v36 }
 0x260   : > { %v497_v39 = vmul.f32 0.2, %v496_v38 }
 0x262   : > { %v498_v40 = vmax.f32 %v496_v38, %v497_v39 }
 0x264   : > { %499 = vst [vmem:[%s224_s26] sm:$0xff] %v498_v40 }
 0x265   : > { %835 = shalt.err (!%p832_p5)
}
 0x266   : > { %s836_s27 = scalar_lea.hbm %s1122_s19, 128  ;;  %s840_s20 = scalar_lea.hbm %s1174_s3, 256 }
 0x267   : > { %p837_p9 = scmp.ne.s32.totalorder %s1122_s19, %s836_s27  ;;  %p841_p3 = scmp.lt.u32.totalorder %s1122_s19, %s1174_s3 }
 0x268   : > { %p842_p7 = scmp.lt.u32.totalorder %s840_s20, %s836_s27  ;;  %p844_p13 = scmp.lt.u32.totalorder %s836_s27, %s1122_s19 }
 0x269   : > { %p838_p1 = pnand %p837_p9, %p1038_p10 }
 0x26a   : > { %p843_p4 = por %p842_p7, %p841_p3 }
 0x26b   : > { %p839_p2 = pneg %p838_p1 }
 0x26c   : > { %p845_p6 = por %p844_p13, %p843_p4 }
 0x26e   : > { %p846_p8 = pnand %p845_p6, %p839_p2 }
 0x270   : > { %849 = shalt.err (!%p846_p8)
}
 0x271   : > { %682 = dma.vmem_to_hbm [thread:$0]  (%p1038_p10), %s1124_s7, 128, %s1122_s19, %s501_s25  }
 0x272 PF: > { %s527_s11 = sand.u32 1, %s888_s12   ;;  %p1192_p12 = scmp.ne.s32.totalorder %s1182_s23, 0 }
 0x273   : > { %p1193_p11 = scmp.ge.s32.totalorder %s908_s17, 2  ;;  %s528_s18 = scalar_lea.sflag [#allocation5], %s527_s11 }
 0x275   : > { %p693_p0 = pnand %p1193_p11, %p1192_p12 }
 0x277   : > { %883 = dma.done.wait (!%p693_p0), %s528_s18, 128  }
 0x278   : > { %885 = vsyncadd (!%p693_p0), %s528_s18, 4294967168  ;;  %s20_s17 = sadd.s32 1, %s908_s17   ;;  %s1194_s12 = smov %s892_s13 }
 0x279   : > { %p17_p5 = scmp.ge.s32.totalorder %s20_s17, 4   ;;  %s1195_s13 = smov %s896_s14 }
 0x27a   : > { %s1196_s14 = smov %s1047_s5  ;;  %s1197_s15 = smov %s904_s16 }
 0x27b   : > { %s1198_s16 = smov %s1200_s28  ;;  %19 = sbr.rel (!%p17_p5) target bundleno = 7 (0x7), region = 85 }
 0x282   :  { %533 = vsyncpa [#allocation4], 1 }
 0x283   :  { %535 = vsyncpa [#allocation4 + $0x1], 1 }
 0x284   :  { %536 = vsyncpa [#allocation7], 1 }
 0x285   :  { %537 = vsyncpa [#allocation5], 1 }
 0x286   :  { %539 = vsyncpa [#allocation5 + $0x1], 1 }

</bundles_post_ra>
